<compile_context>
chip_gen: v5e
topology: v5e:2x2
jax: 0.10.0
libtpu: 0.0.40
codegen_flags: <defaults>
</compile_context>

<pallas_src>
from typing import NamedTuple

import jax
import jax.numpy as jnp
from jax.experimental import pallas as pl
from jax.experimental.pallas import tpu as pltpu


# ----------------------------------------------------------------------------
# Kernels
# ----------------------------------------------------------------------------
def _dueling_kernel(obs_ref, w1_ref, b1_ref, wh_ref, bh_ref, q_ref):
    """Exact dueling head: one MXU matmul for [W2|w3], then aggregate in-kernel."""
    a = q_ref.shape[-1]  # number of actions (static)

    # features = ReLU(obs @ W1 + b1)   (f32 accumulate, f32 bias)
    x = jnp.dot(obs_ref[...], w1_ref[...], preferred_element_type=jnp.float32)
    x = jnp.maximum(x + b1_ref[...], 0.0)

    # single head matmul covering advantage columns + value column
    head = jnp.dot(x.astype(wh_ref.dtype), wh_ref[...],
                   preferred_element_type=jnp.float32) + bh_ref[...]
    adv = head[:, :a]          # [tile_b, A]
    val = head[:, a:a + 1]     # [tile_b, 1]

    q = val + (adv - jnp.mean(adv, axis=-1, keepdims=True))
    q_ref[...] = q.astype(q_ref.dtype)


def _folded_kernel(obs_ref, w1_ref, b1_ref, wq_ref, bq_ref, q_ref):
    """Algebraically folded head: q = relu(obs@W1+b1) @ Wq + bq (no epilogue)."""
    x = jnp.dot(obs_ref[...], w1_ref[...], preferred_element_type=jnp.float32)
    x = jnp.maximum(x + b1_ref[...], 0.0)
    q = jnp.dot(x.astype(wq_ref.dtype), wq_ref[...],
                preferred_element_type=jnp.float32) + bq_ref[...]
    q_ref[...] = q.astype(q_ref.dtype)


# ----------------------------------------------------------------------------
# Parameter preparation (run ONCE per weight update, NOT per forward)
# ----------------------------------------------------------------------------
class DDQNParams(NamedTuple):
    w1: jax.Array    # [S, H]   (compute dtype)
    b1: jax.Array    # [1, H]   (f32)
    wh: jax.Array    # [H, A+1] ([W2|w3]) or [H, A] (folded)  (compute dtype)
    bh: jax.Array    # [1, A+1] or [1, A]                     (f32)
    folded: bool
    action_size: int


def prepare_params(w1, b1, w2, b2, w3, b3, *, fold_head=False,
                   compute_dtype=jnp.float32):
    """Build kernel-ready params.  Weights are [in, out], biases [1, out]."""
    a = w2.shape[1]
    if fold_head:
        # q = x @ (W2 - mean_col(W2) + w3) + (b2 - mean(b2) + b3)
        wh = (w2 - jnp.mean(w2, axis=1, keepdims=True)) + w3   # [H, A]
        bh = (b2 - jnp.mean(b2, axis=1, keepdims=True)) + b3   # [1, A]
    else:
        wh = jnp.concatenate([w2, w3], axis=1)                 # [H, A+1]
        bh = jnp.concatenate([b2, b3], axis=1)                 # [1, A+1]
    return DDQNParams(
        w1=w1.astype(compute_dtype),
        b1=b1.astype(jnp.float32),
        wh=wh.astype(compute_dtype),
        bh=bh.astype(jnp.float32),
        folded=bool(fold_head),
        action_size=int(a),
    )


# ----------------------------------------------------------------------------
# Forward
# ----------------------------------------------------------------------------
_GRIDLESS_MAX_B = 4096       # whole-array path up to this many rows
_DEFAULT_BLOCK_B = 2048      # big batch tiles -> only a handful of grid steps


def ddqn_forward(obs, params: DDQNParams, *, block_b=None):
    """Dueling-DQN forward.  obs is [B, S]."""
    obs = obs.astype(jnp.float32)          # mirrors obs.float() in PyTorch
    compute_dtype = params.w1.dtype
    obs = obs.astype(compute_dtype)

    B, S = obs.shape
    H = params.w1.shape[1]
    Ah = params.wh.shape[1]                # A (folded) or A+1 (exact)
    A = params.action_size
    kernel = _folded_kernel if params.folded else _dueling_kernel

    itemsize = jnp.dtype(compute_dtype).itemsize
    cost = pl.CostEstimate(
        flops=2 * B * (S * H + H * Ah),
        transcendentals=0,
        bytes_accessed=itemsize * (B * S + S * H + H * Ah) + 4 * (H + Ah + B * A),
    )
    out_shape = jax.ShapeDtypeStruct((B, A), jnp.float32)

    if block_b is None:
        block_b = None if B <= _GRIDLESS_MAX_B else _DEFAULT_BLOCK_B

    if block_b is None or block_b >= B:
        # Single-step path: no grid, whole arrays as VMEM blocks (no per-step
        # bookkeeping, one lane-sparse writeback total).
        needed = (2 * itemsize * (B * S + S * H + H * Ah)
                  + 4 * (H + Ah) + 8 * B * (H + A))
        vmem_limit = int(min(max(needed, 16 << 20), 64 << 20))
        vmem = pl.BlockSpec(memory_space=pltpu.MemorySpace.VMEM)
        return pl.pallas_call(
            kernel,
            out_shape=out_shape,
            in_specs=[vmem, vmem, vmem, vmem, vmem],
            out_specs=vmem,
            cost_estimate=cost,
            compiler_params=pltpu.CompilerParams(vmem_limit_bytes=vmem_limit),
        )(obs, params.w1, params.b1, params.wh, params.bh)

    # Batch-tiled path: few, large steps; cdiv grid handles a ragged tail
    # (rows past B are masked on writeback; compute is row-independent).
    grid = (pl.cdiv(B, block_b),)
    return pl.pallas_call(
        kernel,
        out_shape=out_shape,
        grid=grid,
        in_specs=[
            pl.BlockSpec((block_b, S), lambda i: (i, 0)),   # obs tile
            pl.BlockSpec((S, H), lambda i: (0, 0)),         # W1 (resident)
            pl.BlockSpec((1, H), lambda i: (0, 0)),         # b1
            pl.BlockSpec((H, Ah), lambda i: (0, 0)),        # head weights
            pl.BlockSpec((1, Ah), lambda i: (0, 0)),        # head bias
        ],
        out_specs=pl.BlockSpec((block_b, A), lambda i: (i, 0)),
        cost_estimate=cost,
        compiler_params=pltpu.CompilerParams(
            dimension_semantics=("parallel",),   # v7x megacore shards batch steps
        ),
    )(obs, params.w1, params.b1, params.wh, params.bh)


# ----------------------------------------------------------------------------
# Init / reference
# ----------------------------------------------------------------------------
def init_raw_params(key, state_size, action_size, hidd_ch):
    """Deterministic init mimicking PyTorch nn.Linear default U[-1/sqrt(fan_in), +]."""
    ks = jax.random.split(key, 6)

    def linear(kw, kb, fan_in, fan_out):
        bound = 1.0 / jnp.sqrt(fan_in)
        w = jax.random.uniform(kw, (fan_in, fan_out), jnp.float32, -bound, bound)
        b = jax.random.uniform(kb, (1, fan_out), jnp.float32, -bound, bound)
        return w, b

    w1, b1 = linear(ks[0], ks[1], state_size, hidd_ch)
    w2, b2 = linear(ks[2], ks[3], hidd_ch, action_size)
    w3, b3 = linear(ks[4], ks[5], hidd_ch, 1)
    return w1, b1, w2, b2, w3, b3


def _reference(obs, w1, b1, w2, b2, w3, b3):
    """Plain-JAX reference with the same math as the PyTorch forward."""
    x = jnp.maximum(obs.astype(jnp.float32) @ w1 + b1, 0.0)
    adv = x @ w2 + b2
    val = x @ w3 + b3
    return val + (adv - adv.mean(-1, keepdims=True))


# ----------------------------------------------------------------------------
# Test
# ----------------------------------------------------------------------------
if __name__ == "__main__":
    state_size = 16
    action_size = 4
    hidd_ch = 128   # module default
    batch = 8

    key = jax.random.PRNGKey(0)
    k_obs, k_obs_big, k_params = jax.random.split(key, 3)

    raw = init_raw_params(k_params, state_size, action_size, hidd_ch)

    # Params prepared once (per weight update), not per forward call.
    params_exact = prepare_params(*raw)                      # bit-exact two-head math
    params_folded = prepare_params(*raw, fold_head=True)     # folded, lane-dense epilogue

    # 1) small (inference / act()) batch: single-step gridless kernel, exact head
    obs = jax.random.normal(k_obs, (batch, state_size), jnp.float32)
    q = jax.block_until_ready(ddqn_forward(obs, params_exact))
    q_ref = _reference(obs, *raw)
    assert q.shape == (batch, action_size)
    assert jnp.allclose(q, q_ref, atol=1e-5, rtol=1e-5), float(jnp.max(jnp.abs(q - q_ref)))

    # 2) replay-sized, non-divisible batch: cdiv batch grid with big tiles
    big_b = 300
    obs_big = jax.random.normal(k_obs_big, (big_b, state_size), jnp.float32)
    q_big = jax.block_until_ready(ddqn_forward(obs_big, params_exact, block_b=256))
    q_big_ref = _reference(obs_big, *raw)
    assert q_big.shape == (big_b, action_size)
    assert jnp.allclose(q_big, q_big_ref, atol=1e-5, rtol=1e-5), float(
        jnp.max(jnp.abs(q_big - q_big_ref))
    )

    # 3) folded head (optional fast path): matches reference to ~1e-5/1e-4
    q_fold = jax.block_until_ready(ddqn_forward(obs, params_folded))
    assert q_fold.shape == (batch, action_size)
    assert jnp.allclose(q_fold, q_ref, atol=1e-4, rtol=1e-4), float(
        jnp.max(jnp.abs(q_fold - q_ref))
    )

    print("KERNEL_OK")
</pallas_src>

<mosaic_0001>
module attributes {stable_mosaic.version = 11 : i64} {
  func.func @_dueling_kernel(%arg0: memref<8x16xf32, #tpu.memory_space<vmem>>, %arg1: memref<16x128xf32, #tpu.memory_space<vmem>>, %arg2: memref<1x128xf32, #tpu.memory_space<vmem>>, %arg3: memref<128x5xf32, #tpu.memory_space<vmem>>, %arg4: memref<1x5xf32, #tpu.memory_space<vmem>>, %arg5: memref<8x4xf32, #tpu.memory_space<vmem>>) attributes {dimension_semantics = [], scalar_prefetch = 0 : i64, scratch_operands = 0 : i64, tpu.core_type = #tpu.core_type<tc>} {
    %c0 = arith.constant 0 : index
    %c0_0 = arith.constant 0 : index
    %0 = vector.load %arg0[%c0, %c0_0] : memref<8x16xf32, #tpu.memory_space<vmem>>, vector<8x16xf32>
    %c0_1 = arith.constant 0 : index
    %c0_2 = arith.constant 0 : index
    %1 = vector.load %arg1[%c0_1, %c0_2] : memref<16x128xf32, #tpu.memory_space<vmem>>, vector<16x128xf32>
    %cst = arith.constant dense<0.000000e+00> : vector<8x128xf32>
    %2 = tpu.matmul %0, %1, %cst {dimension_numbers = #tpu.dot_dimension_numbers<[1], [0], [0], [1], [0, 0, 1, 1], [], []>} : vector<8x16xf32>, vector<16x128xf32>, vector<8x128xf32> -> vector<8x128xf32>
    %c0_3 = arith.constant 0 : index
    %c0_4 = arith.constant 0 : index
    %3 = vector.load %arg2[%c0_3, %c0_4] : memref<1x128xf32, #tpu.memory_space<vmem>>, vector<1x128xf32>
    %4 = vector.broadcast %3 : vector<1x128xf32> to vector<8x128xf32>
    %5 = arith.addf %2, %4 : vector<8x128xf32>
    %cst_5 = arith.constant 0.000000e+00 : f32
    %6 = vector.broadcast %cst_5 : f32 to vector<8x128xf32>
    %7 = arith.maximumf %5, %6 : vector<8x128xf32>
    %c0_6 = arith.constant 0 : index
    %c0_7 = arith.constant 0 : index
    %8 = vector.load %arg3[%c0_6, %c0_7] : memref<128x5xf32, #tpu.memory_space<vmem>>, vector<128x5xf32>
    %cst_8 = arith.constant dense<0.000000e+00> : vector<8x5xf32>
    %9 = tpu.matmul %7, %8, %cst_8 {dimension_numbers = #tpu.dot_dimension_numbers<[1], [0], [0], [1], [0, 0, 1, 1], [], []>} : vector<8x128xf32>, vector<128x5xf32>, vector<8x5xf32> -> vector<8x5xf32>
    %c0_9 = arith.constant 0 : index
    %c0_10 = arith.constant 0 : index
    %10 = vector.load %arg4[%c0_9, %c0_10] : memref<1x5xf32, #tpu.memory_space<vmem>>, vector<1x5xf32>
    %11 = vector.broadcast %10 : vector<1x5xf32> to vector<8x5xf32>
    %12 = arith.addf %9, %11 : vector<8x5xf32>
    %13 = vector.extract_strided_slice %12 {offsets = [0, 0], sizes = [8, 4], strides = [1, 1]} : vector<8x5xf32> to vector<8x4xf32>
    %14 = vector.extract_strided_slice %12 {offsets = [0, 4], sizes = [8, 1], strides = [1, 1]} : vector<8x5xf32> to vector<8x1xf32>
    %cst_11 = arith.constant dense<0.000000e+00> : vector<8xf32>
    %15 = vector.multi_reduction <add>, %13, %cst_11 [1] : vector<8x4xf32> to vector<8xf32>
    %16 = vector.shape_cast %15 : vector<8xf32> to vector<8x1xf32>
    %cst_12 = arith.constant 4.000000e+00 : f32
    %17 = vector.broadcast %cst_12 : f32 to vector<8x1xf32>
    %18 = arith.divf %16, %17 : vector<8x1xf32>
    %19 = vector.broadcast %18 : vector<8x1xf32> to vector<8x4xf32>
    %20 = arith.subf %13, %19 : vector<8x4xf32>
    %21 = vector.broadcast %14 : vector<8x1xf32> to vector<8x4xf32>
    %22 = arith.addf %21, %20 : vector<8x4xf32>
    %c0_13 = arith.constant 0 : index
    %c0_14 = arith.constant 0 : index
    %23 = vector.load %arg5[%c0_13, %c0_14] : memref<8x4xf32, #tpu.memory_space<vmem>>, vector<8x4xf32>
    tpu.vector_store %arg5[%c0_13, %c0_14], %22 {strides = array<i32>} : memref<8x4xf32, #tpu.memory_space<vmem>>, vector<8x4xf32>,
    return
  }
}

</mosaic_0001>

<bundles_post_ra>
// kernel: tpu_custom_call.1
= control target key start
LH: loop header
LB: loop body
LE: loop exit
PB: predicated region body
PF: predicated region fallthrough
CT: control target
= control target key end

     0   :  { %vm27_vm0 = vcmask 130048   ;;  %v124_v23 = vmov 4   ;;  %vm92_vm1 = vcmask 31744   ;;  %v125_v28 = vmov 4.0   ;;  %s224_s1 = inlined_call_operand.vmem [shape: f32[16,128], index: 1, kind: input, shape index: {}]   ;;  %s225_s0 = inlined_call_operand.vmem [shape: f32[8,16], index: 0, kind: input, shape index: {}]   ;;  %s226_s3 = inlined_call_operand.vmem [shape: f32[128,5], index: 3, kind: input, shape index: {}]   ;;  %s227_s2 = inlined_call_operand.vmem [shape: f32[1,128], index: 2, kind: input, shape index: {}]   ;;  %s228_s4 = inlined_call_operand.vmem [shape: f32[1,5], index: 4, kind: input, shape index: {}]   ;;  %s229_s5 = inlined_call_operand.vmem [shape: f32[8,4], index: 5, kind: output, shape index: {}]  }
   0x1   :  { %v22_v0 = vld [vmem:[%s224_s1 + $0x8] sm:$0xff]  ;;  %v21_v1 = vld [vmem:[%s224_s1] sm:$0xff]  ;;  %v67_v3 = vld [vmem:[%s226_s3 + $0x78] sm:$0xff]  ;;  %119 = vset.pattern.permute.xlu0 %v124_v23  ;;  %122 = vrcp.f32 %v125_v28 }
   0x2   :  { %45 = vmatpush.msra.mxu0 %v22_v0  ;;  %v20_v2 = vld [vmem:[%s225_s0] sm:$0xff]  ;;  %v66_v4 = vld [vmem:[%s226_s3 + $0x70] sm:$0xff]  ;;  %72 = vmatpush.msra.mxu1 %v67_v3  ;;  %v65_v5 = vld [vmem:[%s226_s3 + $0x68] sm:$0xff] }
   0x3   :  { %v64_v6 = vld [vmem:[%s226_s3 + $0x60] sm:$0xff]  ;;  %v63_v7 = vld [vmem:[%s226_s3 + $0x58] sm:$0xff]  ;;  %v62_v8 = vld [vmem:[%s226_s3 + $0x50] sm:$0xff] }
   0x4   :  { %46 = vmatpush.msra.mxu0 %v21_v1  ;;  %73 = vmatpush.msra.mxu1 %v66_v4  ;;  %v61_v9 = vld [vmem:[%s226_s3 + $0x48] sm:$0xff]  ;;  %v60_v10 = vld [vmem:[%s226_s3 + $0x40] sm:$0xff]  ;;  %v59_v11 = vld [vmem:[%s226_s3 + $0x38] sm:$0xff] }
   0x5   :  { %116 = vmatmul.msk.f32.vlgmr.msra.gmra.mxu0 %vm27_vm0, %v20_v2  ;;  %v58_v12 = vld [vmem:[%s226_s3 + $0x30] sm:$0xff]  ;;  %v57_v13 = vld [vmem:[%s226_s3 + $0x28] sm:$0xff]  ;;  %v56_v14 = vld [vmem:[%s226_s3 + $0x20] sm:$0xff] }
   0x6   :  { %74 = vmatpush.msra.mxu1 %v65_v5  ;;  %v55_v15 = vld [vmem:[%s226_s3 + $0x18] sm:$0xff]  ;;  %v54_v16 = vld [vmem:[%s226_s3 + $0x10] sm:$0xff]  ;;  %v53_v17 = vld [vmem:[%s226_s3 + $0x8] sm:$0xff] }
   0x7   :  { %v52_v18 = vld [vmem:[%s226_s3] sm:$0xff]  ;;  %v123_v29 = vpop.eup %122 }
   0x8   :  { %75 = vmatpush.msra.mxu1 %v64_v6  ;;  %v120_v19 = vld [vmem:[%s227_s2] ss:$0 sm:$0xff]  ;;  %v97_v30 = vmul.f32 4.0, %v123_v29  ;;  %vm101_vm2 = vweird.f32 %v123_v29 }
   0x9   :  { %v121_v24 = vld [vmem:[%s228_s4] ss:$0 sm:$0xff] }
   0xa   :  { %76 = vmatpush.msra.mxu1 %v63_v7  ;;  %v98_v31 = vsub.f32 1.0, %v97_v30 }
   0xc   :  { %77 = vmatpush.msra.mxu1 %v62_v8  ;;  %v99_v32 = vmul.f32 %v123_v29, %v98_v31 }
   0xe   :  { %78 = vmatpush.msra.mxu1 %v61_v9  ;;  %v100_v33 = vadd.f32 %v123_v29, %v99_v32 }
  0x10   :  { %79 = vmatpush.msra.mxu1 %v60_v10  ;;  %v102_v34 = vsel %vm101_vm2, %v123_v29, %v100_v33 }
  0x12   :  { %80 = vmatpush.msra.mxu1 %v59_v11 }
  0x14   :  { %81 = vmatpush.msra.mxu1 %v58_v12 }
  0x16   :  { %82 = vmatpush.msra.mxu1 %v57_v13 }
  0x18   :  { %83 = vmatpush.msra.mxu1 %v56_v14 }
  0x1a   :  { %84 = vmatpush.msra.mxu1 %v55_v15 }
  0x1c   :  { %85 = vmatpush.msra.mxu1 %v54_v16 }
  0x1e   :  { %86 = vmatpush.msra.mxu1 %v53_v17 }
  0x20   :  { %87 = vmatpush.msra.mxu1 %v52_v18 }
  0x82   :  { %v48_v20 = vpop.f32.mrf.mxu0 }
  0x83   :  { %v49_v21 = vadd.f32 %v120_v19, %v48_v20 }
  0x85   :  { %v51_v22 = vmax.f32 %v49_v21, 0.0 }
  0x87   :  { %88 = vmatmul.f32.vlgmr.msra.gmra.mxu1 %v51_v22 }
 0x104   :  { %v89_v25 = vpop.f32.mrf.mxu1 }
 0x105   :  { %v90_v26 = vadd.f32 %v121_v24, %v89_v25 }
 0x107   :  { %v93_v27 = vsel %vm92_vm1, %v90_v26, 0.0 }
 0x108   :  { %94 = vadd.xlane.f32.xlu0 %v93_v27 }
 0x11c   :  { %107 = vperm.xlu0 %119, %v90_v26  }
 0x17b   :  { %v95_v35 = vpop.xlane.xlu0 %94 }
 0x17c   :  { %v103_v36 = vmul.f32 %v102_v34, %v95_v35 }
 0x17e   :  { %v104_v37 = vsub.f32 %v90_v26, %v103_v36 }
 0x18e   :  { %v108_v38 = vpop.permute.xlu0 %107 }
 0x18f   :  { %v110_v39 = vadd.f32 %v108_v38, %v104_v37 }
 0x191   :  { %111 = vst.msk [vmem:[%s229_s5] sm:$0xff] %vm92_vm1, %v110_v39 }

</bundles_post_ra>
